<compile_context>
chip_gen: v7x
topology: tpu7x:2x2x1
jax: 0.10.0
libtpu: 0.0.40
codegen_flags: <defaults>
</compile_context>

<pallas_src>
import functools

import jax
import jax.numpy as jnp
import numpy as np
from jax.experimental import pallas as pl
from jax.experimental.pallas import tpu as pltpu

_LANES = 128
_SUBLANES = 8
_NEG = -1e30  # filler for padded class columns (never wins the softmax)


def _round_up(x, m):
    return (x + m - 1) // m * m


def _ldam_kernel(x_ref, t_ref, m_ref, o_ref, *, s, n_rows, tile_n):
    i = pl.program_id(0)

    x = x_ref[...].astype(jnp.float32)          # (TN, Cp)  cast in-kernel (bf16 ok)
    t = t_ref[...]                              # (TN, 1)   int32 targets
    m = m_ref[...]                              # (1, Cp)   f32 margins (resident)
    tn, cp = x.shape

    # one-hot of target via iota compare (replaces torch scatter_)
    col = jax.lax.broadcasted_iota(jnp.int32, (tn, cp), 1)
    onehot = (col == t).astype(jnp.float32)     # (TN, Cp)

    # output = where(index, x - batch_m, x)  ==  x - m*onehot  (elementwise fuse;
    # no separate batch_m gather-reduction needed)
    adj = x - m * onehot                        # (TN, Cp)
    logits = s * adj                            # s * output

    # target logit: single lane-reduce of the already-adjusted tensor
    tgt = s * jnp.sum(adj * onehot, axis=1, keepdims=True)          # (TN, 1)

    # log-sum-exp (max-shifted) of s*output
    mmax = jnp.max(logits, axis=1, keepdims=True)
    lse = jnp.log(jnp.sum(jnp.exp(logits - mmax), axis=1, keepdims=True)) + mmax
    per_sample = lse - tgt                                          # (TN, 1)

    # mask padded rows of a ragged last tile (select also kills any NaN/Inf
    # coming from undefined out-of-bounds rows)
    row = i * tile_n + jax.lax.broadcasted_iota(jnp.int32, (tn, 1), 0)
    per_sample = jnp.where(row < n_rows, per_sample, 0.0)

    # lane-dense partial-sum block for this tile (summed + /N in the wrapper)
    o_ref[...] = jnp.full(o_ref.shape, jnp.sum(per_sample), dtype=o_ref.dtype)


def ldam_loss(x, target, m_list, s=30.0, tile_n=512):
    """LDAM loss, mean reduction, weight=None. x: (N, C) f32/bf16, target: (N,) int."""
    # TODO(synk): per-class `weight` (weighted mean) not implemented; PyTorch default weight=None.
    # TODO(synk): very large C (tile not fitting VMEM) would need a second grid
    #             axis over C with a streaming/online LSE; not needed at these sizes.
    N, C = x.shape

    # Lane-pad the class dim to a multiple of 128; filler is very negative so
    # padded classes never affect max/LSE (targets are always < C, so onehot=0 there).
    c_pad = _round_up(max(C, _LANES), _LANES)
    if c_pad != C:
        x = jnp.pad(x, ((0, 0), (0, c_pad - C)), constant_values=_NEG)
        m_list = jnp.pad(m_list.astype(jnp.float32), (0, c_pad - C))

    t2d = target.reshape(N, 1).astype(jnp.int32)
    m2d = m_list.reshape(1, c_pad).astype(jnp.float32)

    # Row-tile: multiple of 8 sublanes, no larger than (padded) N, capped by tile_n.
    tn = max(_SUBLANES, min(int(tile_n), _round_up(N, _SUBLANES)))
    tn = _round_up(tn, _SUBLANES)
    num_tiles = pl.cdiv(N, tn)

    kernel = functools.partial(_ldam_kernel, s=float(s), n_rows=N, tile_n=tn)

    partials = pl.pallas_call(
        kernel,
        out_shape=jax.ShapeDtypeStruct((num_tiles, _SUBLANES, _LANES), jnp.float32),
        grid=(num_tiles,),
        in_specs=[
            pl.BlockSpec((tn, c_pad), lambda i: (i, 0)),   # x tile (double-buffered)
            pl.BlockSpec((tn, 1), lambda i: (i, 0)),       # targets for this tile
            pl.BlockSpec((1, c_pad), lambda i: (0, 0)),    # margins, constant -> resident
        ],
        out_specs=pl.BlockSpec((1, _SUBLANES, _LANES), lambda i: (i, 0, 0)),
        compiler_params=pltpu.CompilerParams(
            dimension_semantics=("parallel",),             # megacore-splittable on v7x
            vmem_limit_bytes=32 * 1024 * 1024,
        ),
    )(x, t2d, m2d)

    # tiny finalize in XLA: sum of per-tile partials, divide by global N once
    return jnp.sum(partials[:, 0, 0]) / N


def make_m_list(cls_num_list, max_m=0.5):
    m = 1.0 / np.sqrt(np.sqrt(np.asarray(cls_num_list, dtype=np.float64)))
    m = m * (max_m / np.max(m))
    return jnp.asarray(m, dtype=jnp.float32)


def _ldam_reference(x, target, m_list, s=30.0):
    """Pure-JAX reference matching torch F.cross_entropy(s*output, target, mean)."""
    N, C = x.shape
    onehot = jax.nn.one_hot(target, C, dtype=jnp.float32)
    batch_m = onehot @ m_list.astype(jnp.float32)
    out = x.astype(jnp.float32) - batch_m[:, None] * onehot
    logits = s * out
    lse = jax.scipy.special.logsumexp(logits, axis=1)
    tgt = jnp.sum(logits * onehot, axis=1)
    return jnp.mean(lse - tgt)


if __name__ == "__main__":
    N, C = 64, 128  # small, lane-dense demo; tile_n=32 -> 2 pipelined grid steps
    cls_num_list = [max(1, 1000 - 7 * i) for i in range(C)]
    m_list = make_m_list(cls_num_list, max_m=0.5)

    key = jax.random.PRNGKey(0)
    kx, kt = jax.random.split(key)
    x = jax.random.normal(kx, (N, C), dtype=jnp.float32)
    target = jax.random.randint(kt, (N,), 0, C, dtype=jnp.int32)

    loss = ldam_loss(x, target, m_list, s=30.0, tile_n=32)
    jax.block_until_ready(loss)

    ref = _ldam_reference(x, target, m_list, s=30.0)
    assert jnp.allclose(loss, ref, rtol=2e-3, atol=2e-3), (float(loss), float(ref))
    print("KERNEL_OK")
</pallas_src>

<mosaic_0001>
module attributes {stable_mosaic.version = 11 : i64} {
  func.func @_ldam_kernel(%arg0: i32, %arg1: memref<32x128xf32, #tpu.memory_space<vmem>>, %arg2: memref<32x1xi32, #tpu.memory_space<vmem>>, %arg3: memref<1x128xf32, #tpu.memory_space<vmem>>, %arg4: memref<1x8x128xf32, #tpu.memory_space<vmem>>) attributes {dimension_semantics = [#tpu.dimension_semantics<parallel>], iteration_bounds = array<i64: 2>, scalar_prefetch = 0 : i64, scratch_operands = 0 : i64, tpu.core_type = #tpu.core_type<tc>, window_params = [{transform_indices = @transform_0, window_bounds = array<i64: 32, 128>}, {transform_indices = @transform_1, window_bounds = array<i64: 32, 1>}, {pipeline_mode = #tpu.pipeline_mode<synchronous>, transform_indices = @transform_2, window_bounds = array<i64: 1, 128>}, {transform_indices = @transform_3, window_bounds = array<i64: 1, 8, 128>}]} {
    %c0 = arith.constant 0 : index
    %c0_0 = arith.constant 0 : index
    %0 = vector.load %arg1[%c0, %c0_0] : memref<32x128xf32, #tpu.memory_space<vmem>>, vector<32x128xf32>
    %c0_1 = arith.constant 0 : index
    %c0_2 = arith.constant 0 : index
    %1 = vector.load %arg2[%c0_1, %c0_2] : memref<32x1xi32, #tpu.memory_space<vmem>>, vector<32x1xi32>
    %c0_3 = arith.constant 0 : index
    %c0_4 = arith.constant 0 : index
    %2 = vector.load %arg3[%c0_3, %c0_4] : memref<1x128xf32, #tpu.memory_space<vmem>>, vector<1x128xf32>
    %3 = tpu.iota {dimensions = array<i32: 1>} : vector<32x128xi32>
    %4 = vector.broadcast %1 : vector<32x1xi32> to vector<32x128xi32>
    %5 = arith.cmpi eq, %3, %4 : vector<32x128xi32>
    %6 = arith.extui %5 : vector<32x128xi1> to vector<32x128xi32>
    %7 = arith.sitofp %6 : vector<32x128xi32> to vector<32x128xf32>
    %8 = vector.broadcast %2 : vector<1x128xf32> to vector<32x128xf32>
    %9 = arith.mulf %8, %7 : vector<32x128xf32>
    %10 = arith.subf %0, %9 : vector<32x128xf32>
    %cst = arith.constant 3.000000e+01 : f32
    %11 = vector.broadcast %cst : f32 to vector<32x128xf32>
    %12 = arith.mulf %11, %10 : vector<32x128xf32>
    %13 = arith.mulf %10, %7 : vector<32x128xf32>
    %cst_5 = arith.constant dense<0.000000e+00> : vector<32xf32>
    %14 = vector.multi_reduction <add>, %13, %cst_5 [1] : vector<32x128xf32> to vector<32xf32>
    %15 = vector.shape_cast %14 : vector<32xf32> to vector<32x1xf32>
    %cst_6 = arith.constant 3.000000e+01 : f32
    %16 = vector.broadcast %cst_6 : f32 to vector<32x1xf32>
    %17 = arith.mulf %16, %15 : vector<32x1xf32>
    %cst_7 = arith.constant dense<0xFF800000> : vector<32xf32>
    %18 = vector.multi_reduction <maximumf>, %12, %cst_7 [1] : vector<32x128xf32> to vector<32xf32>
    %19 = vector.shape_cast %18 : vector<32xf32> to vector<32x1xf32>
    %20 = vector.broadcast %19 : vector<32x1xf32> to vector<32x128xf32>
    %21 = arith.subf %12, %20 : vector<32x128xf32>
    %22 = math.exp %21 : vector<32x128xf32>
    %cst_8 = arith.constant dense<0.000000e+00> : vector<32xf32>
    %23 = vector.multi_reduction <add>, %22, %cst_8 [1] : vector<32x128xf32> to vector<32xf32>
    %24 = vector.shape_cast %23 : vector<32xf32> to vector<32x1xf32>
    %25 = math.log %24 : vector<32x1xf32>
    %26 = arith.addf %25, %19 : vector<32x1xf32>
    %27 = arith.subf %26, %17 : vector<32x1xf32>
    %c32_i32 = arith.constant 32 : i32
    %28 = arith.muli %arg0, %c32_i32 : i32
    %29 = tpu.iota {dimensions = array<i32: 0>} : vector<32x1xi32>
    %30 = vector.broadcast %28 : i32 to vector<32x1xi32>
    %31 = arith.addi %30, %29 : vector<32x1xi32>
    %c64_i32 = arith.constant 64 : i32
    %32 = vector.broadcast %c64_i32 : i32 to vector<32x1xi32>
    %33 = arith.cmpi slt, %31, %32 : vector<32x1xi32>
    %cst_9 = arith.constant 0.000000e+00 : f32
    %34 = vector.broadcast %cst_9 : f32 to vector<32x1xf32>
    %35 = arith.select %33, %27, %34 : vector<32x1xi1>, vector<32x1xf32>
    %36 = vector.shape_cast %35 : vector<32x1xf32> to vector<1x32x1xf32>
    %cst_10 = arith.constant dense<0.000000e+00> : vector<1xf32>
    %37 = vector.multi_reduction <add>, %36, %cst_10 [1, 2] : vector<1x32x1xf32> to vector<1xf32>
    %38 = vector.shape_cast %37 : vector<1xf32> to vector<1x1x1xf32>
    %39 = vector.extract %38[0, 0, 0] : f32 from vector<1x1x1xf32>
    %40 = vector.broadcast %39 : f32 to vector<1x8x128xf32>
    %c0_11 = arith.constant 0 : index
    %c0_12 = arith.constant 0 : index
    %c0_13 = arith.constant 0 : index
    %41 = vector.load %arg4[%c0_11, %c0_12, %c0_13] : memref<1x8x128xf32, #tpu.memory_space<vmem>>, vector<1x8x128xf32>
    tpu.vector_store %arg4[%c0_11, %c0_12, %c0_13], %40 {strides = array<i32>} : memref<1x8x128xf32, #tpu.memory_space<vmem>>, vector<1x8x128xf32>,
    return
  }
  func.func @transform_0(%arg0: i32) -> (i32, i32) {
    %c0_i32 = arith.constant 0 : i32
    %c0_i32_0 = arith.constant 0 : i32
    return %arg0, %c0_i32 : i32, i32
  }
  func.func @transform_1(%arg0: i32) -> (i32, i32) {
    %c0_i32 = arith.constant 0 : i32
    %c0_i32_0 = arith.constant 0 : i32
    return %arg0, %c0_i32 : i32, i32
  }
  func.func @transform_2(%arg0: i32) -> (i32, i32) {
    %c0_i32 = arith.constant 0 : i32
    %c0_i32_0 = arith.constant 0 : i32
    %c0_i32_1 = arith.constant 0 : i32
    return %c0_i32, %c0_i32_0 : i32, i32
  }
  func.func @transform_3(%arg0: i32) -> (i32, i32, i32) {
    %c0_i32 = arith.constant 0 : i32
    %c0_i32_0 = arith.constant 0 : i32
    %c0_i32_1 = arith.constant 0 : i32
    return %arg0, %c0_i32, %c0_i32_0 : i32, i32, i32
  }
}

</mosaic_0001>

<bundles_post_ra>
// kernel: tpu_custom_call.1
= control target key start
LH: loop header
LB: loop body
LE: loop exit
PB: predicated region body
PF: predicated region fallthrough
CT: control target
= control target key end

     0   :  { %8 = vsyncpa [#allocation3], 0  ;;  %s712_s0 = inlined_call_operand.vmem [shape: f32[64,128], index: 0, kind: input, shape index: {}]   ;;  %s713_s1 = inlined_call_operand.vmem [shape: s32[64,1], index: 1, kind: input, shape index: {}]   ;;  %s714_s2 = inlined_call_operand.vmem [shape: f32[1,128], index: 2, kind: input, shape index: {}]   ;;  %s715_s3 = inlined_call_operand.hbm [shape: f32[2,8,128], index: 3, kind: output, shape index: {}]  }
   0x1   :  { %10 = vsyncpa [#allocation3 + $0x1], 0  ;;  %s596_s12 = smov 0   ;;  %s598_s13 = smov 0  }
   0x2   :  { %s600_s14 = smov 0   ;;  %s602_s15 = smov 0  }
   0x3 LB: > { %s617_s16 = sadd.s32 4294967295, %s571_s15   ;;  %s429_s17 = sadd.s32 4294967294, %s571_s15   ;;  %s571_s15 = sphi %s602_s15, %s721_s15   ;;  %s567_s14 = sphi %s600_s14, %s720_s14   ;;  %s563_s13 = sphi %s598_s13, %s719_s13   ;;  %s559_s12 = sphi %s596_s12, %s718_s12  }
   0x4   : > { %s621_s18 = sadd.s32 1, %s571_s15   ;;  %s96_s19 = sadd.s32 1, %s567_s14 }
   0x5   : > { %s93_s20 = ssub.s32 %s571_s15, %s621_s18  ;;  %p106_p0 = scmp.ne.s32.totalorder %s567_s14, %s563_s13 }
   0x6   : > { %p94_p1 = scmp.eq.s32.totalorder %s93_s20, 0  ;;  %p107_p2 = scmp.eq.s32.totalorder %s617_s16, 1 }
   0x7   : > { %p112_p3 = scmp.ne.s32.totalorder %s563_s13, %s559_s12  ;;  %p113_p4 = scmp.eq.s32.totalorder %s429_s17, 1 }
   0x8   : > { %s632_s21 = scalar_select %p94_p1, %s567_s14, %s96_s19  }
   0x9   : > { %p634_p5 = por %p107_p2, %p106_p0  ;;  %p638_p6 = por %p113_p4, %p112_p3 }
   0xa   : > { %p432_p7 = scmp.ge.s32.totalorder %s571_s15, 1  ;;  %p152_p8 = scmp.lt.s32.totalorder %s571_s15, 3 }
   0xc   : > { %p153_p9 = pnand %p432_p7, %p152_p8 }
   0xd   : > { %s434_s24 = sshll.u32 (!%p153_p9), %s617_s16, 2  ;;  %v573_v0 = vmov (!%p153_p9), 0   ;;  %v202_v5 = vlaneseq (!%p153_p9)  ;;  %v442_v7 = vld [vmem:[%s714_s2] ss:$0 sm:$0xff] (!%p153_p9)  ;;  %v574_v10 = vmov (!%p153_p9), 0.0   ;;  %s443_s7 = sshll.u32 (!%p153_p9), %s617_s16, 5 }
   0xe   : > { %156 = sbr.rel (%p153_p9) target bundleno = 708 (0x2c4), region = 32  ;;  %492 = vset.pattern.permute.xlu1 (!%p153_p9), %v573_v0  ;;  %491 = vset.pattern.permute.xlu0 (!%p153_p9), %v573_v0  ;;  %p182_p10 = scmp.lt.s32.totalorder (!%p153_p9), %s434_s24, 7  ;;  %v312_v58 = vstv (!%p153_p9), %s443_s7  ;;  %vm325_vm5 = vcmask (!%p153_p9), 7168  }
   0xf   : > { %v203_v6 = vand.u32 (!%p153_p9), 127, %v202_v5  ;;  %v308_v57 = vshrl.u32 (!%p153_p9), %v202_v5, 7  ;;  %s178_s8 = sand.u32 (!%p153_p9), 1, %s563_s13   ;;  %s445_s17 = sshll.u32 (!%p153_p9), %s617_s16, 7 }
  0x10   : > { %s433_s9 = sshll.u32 (!%p153_p9), %s178_s8, 3  ;;  %s345_s26 = scalar_lea.sflag (!%p153_p9), [#allocation3], %s178_s8 }
  0x11   : > { %v309_v61 = vadd.s32 (!%p153_p9), 8, %v308_v57  ;;  %v310_v63 = vadd.s32 (!%p153_p9), 16, %v308_v57  ;;  %v313_v0 = vadd.s32 (!%p153_p9), %v312_v58, %v308_v57  ;;  %s180_s10 = scalar_lea.vmem (!%p153_p9), [#allocation2], %s433_s9  ;;  %s575_s16 = smov (!%p153_p9), [#allocation2]  }
  0x12   : > { %s358_s11 = sshll.u32 (!%p153_p9), %s180_s10, 4  ;;  %s667_s11 = int_to_ptr.vmem [resolvable:$true] %s358_s11 }
  0x13   : > { %vm317_vm4 = vcmp.lt.s32.totalorder (!%p153_p9), %v313_v0, 64  ;;  %s509_s27 = scalar_lea.vmem (!%p153_p9), %s667_s11, 128 }
  0x14   : > { %p510_p11 = scmp.ne.s32.totalorder (!%p153_p9), %s667_s11, %s509_s27 }
  0x15   : > { %s723_s24 = smov (!%p182_p10, %s434_s24), 7 }
  0x16   : > { %s435_s25 = sshll.u32 %s723_s24, 3  ;;  %p511_p12 = pnand %p510_p11, %p634_p5 }
  0x17   : > { %s191_s28 = scalar_lea.vmem %s713_s1, %s435_s25  ;;  %s185_s4 = scalar_lea.vmem %s712_s0, %s435_s25 }
  0x18   : > { %v199_v1 = vld [vmem:[%s191_s28 + $0x10] sm:$0xff]  ;;  %v197_v2 = vld [vmem:[%s191_s28] sm:$0xff]  ;;  %v200_v3 = vld [vmem:[%s191_s28 + $0x18] sm:$0xff]  ;;  %s672_s25 = scalar_lea.hbm %s715_s3, %s445_s17  ;;  %p512_p13 = pneg %p511_p12 }
  0x19   : > { %211 = vperm.xlu1 %492, %v199_v1   ;;  %205 = vperm.xlu0 %491, %v197_v2   ;;  %v198_v4 = vld [vmem:[%s191_s28 + $0x8] sm:$0xff]  ;;  %v193_v13 = vld [vmem:[%s185_s4] sm:$0xff]  ;;  %v195_v14 = vld [vmem:[%s185_s4 + $0x10] sm:$0xff]  ;;  %s513_s28 = sshll.u32 %s575_s16, 4  ;;  %s514_s28 = int_to_ptr.vmem [resolvable:$false] %s513_s28 }
  0x1a   : > { %v194_v23 = vld [vmem:[%s185_s4 + $0x8] sm:$0xff]  ;;  %v196_v24 = vld [vmem:[%s185_s4 + $0x18] sm:$0xff]  ;;  %s515_s29 = scalar_lea.vmem %s514_s28, 256  ;;  %p516_p0 = scmp.lt.s32.totalorder %s667_s11, %s514_s28 }
  0x1b   : > { %p517_p1 = scmp.lt.s32.totalorder %s515_s29, %s509_s27 }
  0x1d   : > { %214 = vperm.xlu1 %492, %v200_v3   ;;  %208 = vperm.xlu0 %491, %v198_v4   ;;  %p518_p2 = por %p517_p1, %p516_p0 }
  0x1f   : > { %p519_p3 = pnand %p518_p2, %p512_p13 }
  0x98   : > { %v212_v8 = vpop.permute.xlu1 %211  ;;  %v206_v9 = vpop.permute.xlu0 %205 }
  0x99   : > { %vm218_vm0 = vcmp.eq.s32.totalorder %v203_v6, %v212_v8  ;;  %vm216_vm1 = vcmp.eq.s32.totalorder %v203_v6, %v206_v9 }
  0x9a   : > { %v440_v11 = vsel %vm218_vm0, 1.0, %v574_v10  ;;  %v438_v12 = vsel %vm216_vm1, 1.0, %v574_v10 }
  0x9b   : > { %v236_v15 = vmul.f32 %v442_v7, %v440_v11  ;;  %v234_v16 = vmul.f32 %v442_v7, %v438_v12 }
  0x9c   : > { %v215_v17 = vpop.permute.xlu1 %214  ;;  %v209_v18 = vpop.permute.xlu0 %208 }
  0x9d   : > { %vm219_vm2 = vcmp.eq.s32.totalorder %v203_v6, %v215_v17  ;;  %vm217_vm3 = vcmp.eq.s32.totalorder %v203_v6, %v209_v18  ;;  %v238_v19 = vsub.f32 %v193_v13, %v234_v16  ;;  %v240_v20 = vsub.f32 %v195_v14, %v236_v15 }
  0x9e   : > { %v441_v21 = vsel %vm219_vm2, 1.0, %v574_v10  ;;  %v439_v22 = vsel %vm217_vm3, 1.0, %v574_v10  ;;  %v314_v6 = vadd.s32 %v312_v58, %v309_v61 }
  0x9f   : > { %v237_v25 = vmul.f32 %v442_v7, %v441_v21  ;;  %v235_v26 = vmul.f32 %v442_v7, %v439_v22  ;;  %v242_v27 = vmul.f32 30.0, %v238_v19  ;;  %v246_v28 = vmul.f32 %v438_v12, %v238_v19 }
  0xa0   : > { %v248_v29 = vmul.f32 %v440_v11, %v240_v20  ;;  %v244_v31 = vmul.f32 30.0, %v240_v20  ;;  %v311_v7 = vadd.s32 24, %v308_v57  ;;  %v315_v11 = vadd.s32 %v312_v58, %v310_v63 }
  0xa1   : > { %262 = vmax.xlane.f32.xlu0 %v242_v27  ;;  %v239_v30 = vsub.f32 %v194_v23, %v235_v26  ;;  %v241_v32 = vsub.f32 %v196_v24, %v237_v25  ;;  %vm318_vm6 = vcmp.lt.s32.totalorder %v314_v6, 64 }
  0xa2   : > { %v316_v19 = vadd.s32 %v312_v58, %v311_v7  ;;  %vm319_vm7 = vcmp.lt.s32.totalorder %v315_v11, 64 }
  0xa3   : > { %v243_v33 = vmul.f32 30.0, %v239_v30  ;;  %v247_v34 = vmul.f32 %v439_v22, %v239_v30  ;;  %v249_v35 = vmul.f32 %v441_v21, %v241_v32  ;;  %v245_v36 = vmul.f32 30.0, %v241_v32 }
  0xa4   : > { %vm320_vm8 = vcmp.lt.s32.totalorder %v316_v19, 64 }
  0xa5   : > { %264 = vmax.xlane.f32.xlu1 %v243_v33  ;;  %266 = vmax.xlane.f32.xlu0 %v244_v31 }
  0xa9   : > { %268 = vmax.xlane.f32.xlu0 %v245_v36 }
 0x12e   : > { %v263_v37 = vpop.xlane.xlu0 %262 }
 0x12f   : > { %v270_v38 = vsub.f32 %v242_v27, %v263_v37 }
 0x131   : > { %v274_v39 = vmul.f32 1.442695, %v270_v38 }
 0x132   : > { %v265_v40 = vpop.xlane.xlu1 %264  ;;  %v267_v41 = vpop.xlane.xlu0 %266 }
 0x133   : > { %493 = vpow2.f32 %v274_v39  ;;  %v271_v42 = vsub.f32 %v243_v33, %v265_v40  ;;  %v272_v43 = vsub.f32 %v244_v31, %v267_v41 }
 0x135   : > { %v276_v44 = vmul.f32 1.442695, %v271_v42  ;;  %v278_v45 = vmul.f32 1.442695, %v272_v43 }
 0x136   : > { %v655_v46 = vpop.xlane.xlu0 %268 }
 0x137   : > { %495 = vpow2.f32 %v276_v44  ;;  %v273_v47 = vsub.f32 %v245_v36, %v655_v46 }
 0x138   : > { %497 = vpow2.f32 %v278_v45 }
 0x139   : > { %v280_v48 = vmul.f32 1.442695, %v273_v47 }
 0x13b   : > { %499 = vpow2.f32 %v280_v48 }
 0x13d   : > { %v494_v49 = vpop.eup %493 }
 0x13e   : > { %282 = vadd.xlane.f32.xlu1 %v494_v49 }
 0x141   : > { %v496_v50 = vpop.eup %495 }
 0x142   : > { %v498_v51 = vpop.eup %497  ;;  %284 = vadd.xlane.f32.xlu0 %v496_v50 }
 0x143   : > { %286 = vadd.xlane.f32.xlu1 %v498_v51 }
 0x145   : > { %v500_v52 = vpop.eup %499 }
 0x146   : > { %288 = vadd.xlane.f32.xlu0 %v500_v52 }
 0x147   : > { %250 = vadd.xlane.f32.xlu1 %v246_v28 }
 0x14a   : > { %252 = vadd.xlane.f32.xlu0 %v247_v34 }
 0x14b   : > { %254 = vadd.xlane.f32.xlu1 %v248_v29 }
 0x14e   : > { %256 = vadd.xlane.f32.xlu0 %v249_v35 }
 0x1cb   : > { %v283_v53 = vpop.xlane.xlu1 %282 }
 0x1cc   : > { %501 = vlog2.f32 %v283_v53 }
 0x1cf   : > { %v285_v54 = vpop.xlane.xlu0 %284 }
 0x1d0   : > { %v287_v55 = vpop.xlane.xlu1 %286  ;;  %503 = vlog2.f32 %v285_v54 }
 0x1d1   : > { %505 = vlog2.f32 %v287_v55 }
 0x1d3   : > { %v289_v56 = vpop.xlane.xlu0 %288 }
 0x1d4   : > { %507 = vlog2.f32 %v289_v56  ;;  %v251_v59 = vpop.xlane.xlu1 %250 }
 0x1d5   : > { %v258_v3 = vmul.f32 30.0, %v251_v59 }
 0x1d6   : > { %v502_v60 = vpop.eup %501 }
 0x1d7   : > { %v291_v62 = vmul.f32 0.6931472, %v502_v60  ;;  %v253_v1 = vpop.xlane.xlu0 %252 }
 0x1d8   : > { %v255_v12 = vpop.xlane.xlu1 %254  ;;  %v259_v14 = vmul.f32 30.0, %v253_v1 }
 0x1d9   : > { %v298_v2 = vadd.f32 %v291_v62, %v263_v37  ;;  %v260_v17 = vmul.f32 30.0, %v255_v12 }
 0x1da   : > { %v504_v4 = vpop.eup %503 }
 0x1db   : > { %v506_v8 = vpop.eup %505  ;;  %v293_v9 = vmul.f32 0.6931472, %v504_v4  ;;  %v302_v10 = vsub.f32 %v298_v2, %v258_v3  ;;  %v257_v18 = vpop.xlane.xlu0 %256 }
 0x1dc   : > { %v295_v5 = vmul.f32 0.6931472, %v506_v8  ;;  %v261_v26 = vmul.f32 30.0, %v257_v18 }
 0x1dd   : > { %v299_v13 = vadd.f32 %v293_v9, %v265_v40  ;;  %v321_v20 = vsel %vm317_vm4, %v302_v10, 0.0 }
 0x1de   : > { %v508_v15 = vpop.eup %507  ;;  %v300_v16 = vadd.f32 %v295_v5, %v267_v41  ;;  %v326_v27 = vsel %vm325_vm5, %v321_v20, 0.0 }
 0x1df   : > { %v297_v21 = vmul.f32 0.6931472, %v508_v15  ;;  %v303_v22 = vsub.f32 %v299_v13, %v259_v14 }
 0x1e0   : > { %v304_v23 = vsub.f32 %v300_v16, %v260_v17 }
 0x1e1   : > { %v322_v24 = vsel %vm318_vm6, %v303_v22, 0.0  ;;  %v301_v25 = vadd.f32 %v297_v21, %v655_v46 }
 0x1e2   : > { %v323_v28 = vsel %vm319_vm7, %v304_v23, 0.0  ;;  %v327_v29 = vsel %vm325_vm5, %v322_v24, 0.0 }
 0x1e3   : > { %v305_v30 = vsub.f32 %v301_v25, %v261_v26  ;;  %v328_v31 = vadd.f32 %v327_v29, %v326_v27  ;;  %v329_v32 = vsel %vm325_vm5, %v323_v28, 0.0 }
 0x1e5   : > { %v324_v33 = vsel %vm320_vm8, %v305_v30, 0.0  ;;  %v330_v34 = vadd.f32 %v329_v32, %v328_v31 }
 0x1e6   : > { %v331_v35 = vsel %vm325_vm5, %v324_v33, 0.0 }
 0x1e7   : > { %v332_v36 = vadd.f32 %v331_v35, %v330_v34 }
 0x1e9   : > { %333 = vadd.xlane.f32.xlu1 %v332_v36 }
 0x276   : > { %v334_v37 = vpop.xlane.xlu1 %333 }
 0x277   : > { %v335_v38 = vrot.slane %v334_v37, 4 }
 0x279   : > { %v336_v39 = vadd.f32 %v335_v38, %v334_v37 }
 0x27b   : > { %v337_v40 = vrot.slane %v336_v39, 2 }
 0x27d   : > { %v338_v41 = vadd.f32 %v337_v40, %v336_v39 }
 0x27f   : > { %v339_v42 = vrot.slane %v338_v41, 1 }
 0x281   : > { %v340_v43 = vadd.f32 %v339_v42, %v338_v41 }
 0x283   : > { %448 = vpush %v340_v43 }
 0x2b4   : > { %s449_s19 = spop %448 }
 0x2b5   : > { %v342_v44 = vstv %s449_s19 }
 0x2b6   : > { %343 = vst [vmem:[%s180_s10] sm:$0xff] %v342_v44 }
 0x2b7   : > { %522 = shalt.err (!%p519_p3)
}
 0x2b8   : > { %s523_s30 = scalar_lea.hbm %s672_s25, 128  ;;  %s527_s6 = scalar_lea.hbm %s715_s3, 256 }
 0x2b9   : > { %p524_p4 = scmp.ne.s32.totalorder %s672_s25, %s523_s30  ;;  %p528_p9 = scmp.lt.u32.totalorder %s672_s25, %s715_s3 }
 0x2ba   : > { %p529_p10 = scmp.lt.u32.totalorder %s527_s6, %s523_s30  ;;  %p531_p12 = scmp.lt.u32.totalorder %s523_s30, %s672_s25 }
 0x2bb   : > { %p525_p7 = pnand %p524_p4, %p634_p5 }
 0x2bc   : > { %p530_p11 = por %p529_p10, %p528_p9 }
 0x2bd   : > { %p526_p8 = pneg %p525_p7 }
 0x2be   : > { %p532_p13 = por %p531_p12, %p530_p11 }
 0x2c0   : > { %p533_p0 = pnand %p532_p13, %p526_p8 }
 0x2c2   : > { %536 = shalt.err (!%p533_p0)
}
 0x2c3   : > { %450 = dma.vmem_to_hbm [thread:$0]  (%p634_p5), %s667_s11, 128, %s672_s25, %s345_s26  }
 0x2c4 PF: > { %p456_p1 = scmp.ge.s32.totalorder %s571_s15, 2  ;;  %s370_s9 = sand.u32 1, %s559_s12  }
 0x2c5   : > { %s371_s10 = scalar_lea.sflag [#allocation3], %s370_s9 }
 0x2c6   : > { %p453_p2 = pnand %p456_p1, %p638_p6 }
 0x2c8   : > { %554 = dma.done.wait (!%p453_p2), %s371_s10, 128  }
 0x2c9   : > { %556 = vsyncadd (!%p453_p2), %s371_s10, 4294967168  ;;  %p13_p3 = scmp.ge.s32.totalorder %s621_s18, 4   ;;  %s718_s12 = smov %s563_s13 }
 0x2ca   : > { %s719_s13 = smov %s567_s14  ;;  %s720_s14 = smov %s632_s21 }
 0x2cb   : > { %s721_s15 = smov %s621_s18  ;;  %15 = sbr.rel (!%p13_p3) target bundleno = 3 (0x3), region = 70 }
 0x2d2   :  { %376 = vsyncpa [#allocation3], 1 }
 0x2d3   :  { %378 = vsyncpa [#allocation3 + $0x1], 1 }

</bundles_post_ra>
